<compile_context>
chip_gen: v7x
topology: tpu7x:2x2x1
jax: 0.10.0
libtpu: 0.0.40
codegen_flags: <defaults>
</compile_context>

<pallas_src>
import jax
import jax.numpy as jnp
from jax.experimental import pallas as pl
from jax.experimental.pallas import tpu as pltpu


_LANE = 128        # pad feature (lane) dims to multiples of this
_SUBLANE = 8       # pad batch (sublane) dim to multiples of this (f32)
_BATCH_TILE = 256  # batch tile for large batches (multiple of 256 fills v6e/v7x MXU rows)


def _round_up(n, m):
    return ((n + m - 1) // m) * m


def _make_mlp_kernel(num_layers):
    """Fused [Linear -> Sigmoid] x num_layers. refs = (x, w0, b0, w1, b1, ..., out)."""

    def kernel(*refs):
        x_ref = refs[0]
        o_ref = refs[-1]
        h = x_ref[...].astype(jnp.float32)           # (TB, D0p), stays in vregs/VMEM
        for l in range(num_layers):                  # static unroll over layers
            w_ref = refs[1 + 2 * l]                  # (Dinp, Doutp)  bf16
            b_ref = refs[2 + 2 * l]                  # (1, Doutp)     f32
            # bf16 MXU operands, f32 accumulation.
            y = jnp.dot(h.astype(jnp.bfloat16), w_ref[...],
                        preferred_element_type=jnp.float32)
            y = y + b_ref[...]                       # sublane-broadcast bias add
            # sigmoid(y) = 0.5*(tanh(0.5*y)+1): one exact EUP op (no approx recip).
            h = 0.5 * (jnp.tanh(0.5 * y) + 1.0)
        o_ref[...] = h.astype(o_ref.dtype)

    return kernel


def init_params(net_plane, key):
    """Parameters matching nn.Linear shapes; weights stored transposed (din, dout), f32."""
    params = []
    for i in range(len(net_plane) - 1):
        din, dout = net_plane[i], net_plane[i + 1]
        key, kw, kb = jax.random.split(key, 3)
        bound = 1.0 / jnp.sqrt(float(din))
        w_t = jax.random.uniform(kw, (din, dout), jnp.float32, -bound, bound)
        b = jax.random.uniform(kb, (dout,), jnp.float32, -bound, bound)
        params.append((w_t, b))
    return params


def prepare_params(params):
    """One-time prep (keep OUT of the jitted forward): zero-pad every (din, dout)
    to lane multiples and cast W to bf16.  Zero W pad rows/cols guarantee the
    pad lanes of an activation (which hold sigmoid(0)=0.5) never leak into
    valid output lanes, so results are exact up to bf16 rounding."""
    prepped = []
    for w_t, b in params:
        din, dout = w_t.shape
        dinp, doutp = _round_up(din, _LANE), _round_up(dout, _LANE)
        w_p = jnp.zeros((dinp, doutp), jnp.float32).at[:din, :dout].set(w_t)
        b_p = jnp.zeros((1, doutp), jnp.float32).at[0, :dout].set(b)
        # Correctness invariant the kernel relies on: W pad rows/cols are zero.
        assert bool(jnp.all(w_p[din:, :] == 0.0))
        assert bool(jnp.all(w_p[:, dout:] == 0.0))
        prepped.append((w_p.astype(jnp.bfloat16), b_p))
    return prepped


def network_forward(x, padded_params):
    """Pallas equivalent of Network.forward (Sigmoid activation).

    `padded_params` must come from prepare_params (already padded + bf16), so
    no per-call padding work happens here.  Returns the PADDED output
    (Bp, Dlast_p); the caller slices [:B, :d_out]."""
    B, d_in = x.shape
    num_layers = len(padded_params)
    d0p = padded_params[0][0].shape[0]
    d_last_p = padded_params[-1][0].shape[1]

    # Batch tiling: big batches use 256-row tiles on a "parallel" grid axis
    # (sharded across v7x's 2 TCs, keeps per-tile VMEM small); tiny batches
    # use a single tile (grid of size 1 ~= grid-less).
    tb = _BATCH_TILE if B >= _BATCH_TILE else _round_up(B, _SUBLANE)
    bp = _round_up(B, tb)
    num_tiles = bp // tb

    x_p = jnp.zeros((bp, d0p), jnp.float32).at[:B, :d_in].set(x)

    in_specs = [pl.BlockSpec((tb, d0p), lambda i: (i, 0))]
    flat_inputs = [x_p]
    flops = 0
    transcendentals = 0
    bytes_accessed = x_p.size * x_p.dtype.itemsize + bp * d_last_p * 4
    for w_p, b_p in padded_params:
        dinp, doutp = w_p.shape
        in_specs.append(pl.BlockSpec((dinp, doutp), lambda i: (0, 0)))
        in_specs.append(pl.BlockSpec((1, doutp), lambda i: (0, 0)))
        flat_inputs += [w_p, b_p]
        flops += 2 * bp * dinp * doutp + bp * doutp
        transcendentals += bp * doutp
        bytes_accessed += (w_p.size * w_p.dtype.itemsize
                           + b_p.size * b_p.dtype.itemsize)

    out_p = pl.pallas_call(
        _make_mlp_kernel(num_layers),
        out_shape=jax.ShapeDtypeStruct((bp, d_last_p), jnp.float32),
        grid=(num_tiles,),
        in_specs=in_specs,
        out_specs=pl.BlockSpec((tb, d_last_p), lambda i: (i, 0)),
        compiler_params=pltpu.CompilerParams(
            dimension_semantics=("parallel",)),
        cost_estimate=pl.CostEstimate(
            flops=flops,
            transcendentals=transcendentals,
            bytes_accessed=bytes_accessed),
    )(*flat_inputs)
    return out_p


def network_forward_ref(x, padded_params, d_out):
    """f32 reference using the same (bf16-rounded) effective weights."""
    d0p = padded_params[0][0].shape[0]
    h = jnp.zeros((x.shape[0], d0p), jnp.float32).at[:, :x.shape[1]].set(x)
    for w_p, b_p in padded_params:
        h = jax.nn.sigmoid(h @ w_p.astype(jnp.float32) + b_p)
    return h[:, :d_out]


# TODO(synk): training_net (MSELoss + SGD step), save/load are training-loop /
# I/O utilities, not part of the forward pass -- not implemented as kernels.


if __name__ == "__main__":
    net_plane = [32, 64, 16]   # small MLP consistent with the module's constructor
    batch = 8

    key = jax.random.PRNGKey(0)
    key, kx = jax.random.split(key)
    x = jax.random.normal(kx, (batch, net_plane[0]), jnp.float32)

    params = init_params(net_plane, key)
    padded_params = prepare_params(params)   # one-time pad + bf16 cast (outside jit)

    fwd = jax.jit(network_forward)
    out_p = jax.block_until_ready(fwd(x, padded_params))
    out = out_p[:batch, :net_plane[-1]]

    ref = network_forward_ref(x, padded_params, net_plane[-1])
    assert out.shape == (batch, net_plane[-1])
    # Only source of mismatch vs this ref is the in-kernel bf16 cast of activations.
    err = float(jnp.max(jnp.abs(out - ref)))
    assert jnp.allclose(out, ref, atol=5e-3, rtol=5e-3), err

    print("KERNEL_OK")
</pallas_src>

<mosaic_0001>
module attributes {stable_mosaic.version = 11 : i64} {
  func.func @kernel(%arg0: i32, %arg1: memref<8x128xf32, #tpu.memory_space<vmem>>, %arg2: memref<128x128xbf16, #tpu.memory_space<vmem>>, %arg3: memref<1x128xf32, #tpu.memory_space<vmem>>, %arg4: memref<128x128xbf16, #tpu.memory_space<vmem>>, %arg5: memref<1x128xf32, #tpu.memory_space<vmem>>, %arg6: memref<8x128xf32, #tpu.memory_space<vmem>>) attributes {dimension_semantics = [#tpu.dimension_semantics<parallel>], iteration_bounds = array<i64: 1>, scalar_prefetch = 0 : i64, scratch_operands = 0 : i64, tpu.core_type = #tpu.core_type<tc>, window_params = [{transform_indices = @transform_0, window_bounds = array<i64: 8, 128>}, {pipeline_mode = #tpu.pipeline_mode<synchronous>, transform_indices = @transform_1, window_bounds = array<i64: 128, 128>}, {pipeline_mode = #tpu.pipeline_mode<synchronous>, transform_indices = @transform_2, window_bounds = array<i64: 1, 128>}, {pipeline_mode = #tpu.pipeline_mode<synchronous>, transform_indices = @transform_3, window_bounds = array<i64: 128, 128>}, {pipeline_mode = #tpu.pipeline_mode<synchronous>, transform_indices = @transform_4, window_bounds = array<i64: 1, 128>}, {transform_indices = @transform_5, window_bounds = array<i64: 8, 128>}]} {
    %c0 = arith.constant 0 : index
    %c0_0 = arith.constant 0 : index
    %0 = vector.load %arg1[%c0, %c0_0] : memref<8x128xf32, #tpu.memory_space<vmem>>, vector<8x128xf32>
    %1 = arith.truncf %0 : vector<8x128xf32> to vector<8x128xbf16>
    %c0_1 = arith.constant 0 : index
    %c0_2 = arith.constant 0 : index
    %2 = vector.load %arg2[%c0_1, %c0_2] : memref<128x128xbf16, #tpu.memory_space<vmem>>, vector<128x128xbf16>
    %cst = arith.constant dense<0.000000e+00> : vector<8x128xf32>
    %3 = tpu.matmul %1, %2, %cst {dimension_numbers = #tpu.dot_dimension_numbers<[1], [0], [0], [1], [0, 0, 1, 1], [], []>} : vector<8x128xbf16>, vector<128x128xbf16>, vector<8x128xf32> -> vector<8x128xf32>
    %c0_3 = arith.constant 0 : index
    %c0_4 = arith.constant 0 : index
    %4 = vector.load %arg3[%c0_3, %c0_4] : memref<1x128xf32, #tpu.memory_space<vmem>>, vector<1x128xf32>
    %5 = vector.broadcast %4 : vector<1x128xf32> to vector<8x128xf32>
    %6 = arith.addf %3, %5 : vector<8x128xf32>
    %cst_5 = arith.constant 5.000000e-01 : f32
    %7 = vector.broadcast %cst_5 : f32 to vector<8x128xf32>
    %8 = arith.mulf %7, %6 : vector<8x128xf32>
    %9 = math.tanh %8 : vector<8x128xf32>
    %cst_6 = arith.constant 1.000000e+00 : f32
    %10 = vector.broadcast %cst_6 : f32 to vector<8x128xf32>
    %11 = arith.addf %9, %10 : vector<8x128xf32>
    %cst_7 = arith.constant 5.000000e-01 : f32
    %12 = vector.broadcast %cst_7 : f32 to vector<8x128xf32>
    %13 = arith.mulf %12, %11 : vector<8x128xf32>
    %14 = arith.truncf %13 : vector<8x128xf32> to vector<8x128xbf16>
    %c0_8 = arith.constant 0 : index
    %c0_9 = arith.constant 0 : index
    %15 = vector.load %arg4[%c0_8, %c0_9] : memref<128x128xbf16, #tpu.memory_space<vmem>>, vector<128x128xbf16>
    %cst_10 = arith.constant dense<0.000000e+00> : vector<8x128xf32>
    %16 = tpu.matmul %14, %15, %cst_10 {dimension_numbers = #tpu.dot_dimension_numbers<[1], [0], [0], [1], [0, 0, 1, 1], [], []>} : vector<8x128xbf16>, vector<128x128xbf16>, vector<8x128xf32> -> vector<8x128xf32>
    %c0_11 = arith.constant 0 : index
    %c0_12 = arith.constant 0 : index
    %17 = vector.load %arg5[%c0_11, %c0_12] : memref<1x128xf32, #tpu.memory_space<vmem>>, vector<1x128xf32>
    %18 = vector.broadcast %17 : vector<1x128xf32> to vector<8x128xf32>
    %19 = arith.addf %16, %18 : vector<8x128xf32>
    %cst_13 = arith.constant 5.000000e-01 : f32
    %20 = vector.broadcast %cst_13 : f32 to vector<8x128xf32>
    %21 = arith.mulf %20, %19 : vector<8x128xf32>
    %22 = math.tanh %21 : vector<8x128xf32>
    %cst_14 = arith.constant 1.000000e+00 : f32
    %23 = vector.broadcast %cst_14 : f32 to vector<8x128xf32>
    %24 = arith.addf %22, %23 : vector<8x128xf32>
    %cst_15 = arith.constant 5.000000e-01 : f32
    %25 = vector.broadcast %cst_15 : f32 to vector<8x128xf32>
    %26 = arith.mulf %25, %24 : vector<8x128xf32>
    %c0_16 = arith.constant 0 : index
    %c0_17 = arith.constant 0 : index
    %27 = vector.load %arg6[%c0_16, %c0_17] : memref<8x128xf32, #tpu.memory_space<vmem>>, vector<8x128xf32>
    tpu.vector_store %arg6[%c0_16, %c0_17], %26 {strides = array<i32>} : memref<8x128xf32, #tpu.memory_space<vmem>>, vector<8x128xf32>,
    return
  }
  func.func @transform_0(%arg0: i32) -> (i32, i32) {
    %c0_i32 = arith.constant 0 : i32
    %c0_i32_0 = arith.constant 0 : i32
    return %arg0, %c0_i32 : i32, i32
  }
  func.func @transform_1(%arg0: i32) -> (i32, i32) {
    %c0_i32 = arith.constant 0 : i32
    %c0_i32_0 = arith.constant 0 : i32
    %c0_i32_1 = arith.constant 0 : i32
    return %c0_i32, %c0_i32_0 : i32, i32
  }
  func.func @transform_2(%arg0: i32) -> (i32, i32) {
    %c0_i32 = arith.constant 0 : i32
    %c0_i32_0 = arith.constant 0 : i32
    %c0_i32_1 = arith.constant 0 : i32
    return %c0_i32, %c0_i32_0 : i32, i32
  }
  func.func @transform_3(%arg0: i32) -> (i32, i32) {
    %c0_i32 = arith.constant 0 : i32
    %c0_i32_0 = arith.constant 0 : i32
    %c0_i32_1 = arith.constant 0 : i32
    return %c0_i32, %c0_i32_0 : i32, i32
  }
  func.func @transform_4(%arg0: i32) -> (i32, i32) {
    %c0_i32 = arith.constant 0 : i32
    %c0_i32_0 = arith.constant 0 : i32
    %c0_i32_1 = arith.constant 0 : i32
    return %c0_i32, %c0_i32_0 : i32, i32
  }
  func.func @transform_5(%arg0: i32) -> (i32, i32) {
    %c0_i32 = arith.constant 0 : i32
    %c0_i32_0 = arith.constant 0 : i32
    return %arg0, %c0_i32 : i32, i32
  }
}

</mosaic_0001>

<bundles_post_ra>
// kernel: network_forward.1
= control target key start
LH: loop header
LB: loop body
LE: loop exit
PB: predicated region body
PF: predicated region fallthrough
CT: control target
= control target key end

     0   :  { %10 = vsyncpa [#allocation3], 0  ;;  %s557_s0 = inlined_call_operand.vmem [shape: f32[8,128], index: 0, kind: input, shape index: {}]   ;;  %s558_s1 = inlined_call_operand.hbm [shape: bf16[128,128], index: 1, kind: input, shape index: {}]   ;;  %s559_s2 = inlined_call_operand.vmem [shape: f32[1,128], index: 2, kind: input, shape index: {}]   ;;  %s560_s3 = inlined_call_operand.hbm [shape: bf16[128,128], index: 3, kind: input, shape index: {}]   ;;  %s561_s4 = inlined_call_operand.vmem [shape: f32[1,128], index: 4, kind: input, shape index: {}]   ;;  %s562_s5 = inlined_call_operand.hbm [shape: f32[8,128], index: 5, kind: output, shape index: {}]  }
   0x1   :  { %11 = vsyncpa [#allocation6], 0 }
   0x2   :  { %12 = vsyncpa [#allocation4], 0  ;;  %s475_s18 = smov [#allocation2]   ;;  %s403_s22 = scalar_lea.hbm %s558_s1, 1024 }
   0x3   :  { %s20_s19 = sshll.u32 %s475_s18, 4  ;;  %p404_p0 = scmp.ne.s32.totalorder %s558_s1, %s403_s22  ;;  %s21_s19 = int_to_ptr.vmem [resolvable:$true] %s20_s19 }
   0x4   :  { %p407_p1 = scmp.lt.u32.totalorder %s403_s22, %s558_s1 }
   0x6   :  { %p409_p2 = pnand %p407_p1, %p404_p0 }
   0x8   :  { %412 = shalt.err (!%p409_p2)
}
   0x9   :  { %s413_s27 = scalar_lea.vmem %s21_s19, 1024  ;;  %p418_p4 = scmp.lt.s32.totalorder %s21_s19, %s21_s19 }
   0xa   :  { %p414_p3 = scmp.ne.s32.totalorder %s21_s19, %s413_s27  ;;  %p419_p5 = scmp.lt.s32.totalorder %s413_s27, %s413_s27 }
   0xc   :  { %p420_p6 = por %p419_p5, %p418_p4 }
   0xe   :  { %p421_p7 = pnand %p420_p6, %p414_p3 }
  0x10   :  { %424 = shalt.err (!%p421_p7)
}
  0x11   :  { %s476_s28 = smov 64   ;;  %s477_s29 = smov 4  }
  0x12   :  { %26 = dma.hbm_to_vmem [thread:$0]  %s558_s1, 1024, %s21_s19, [#allocation3], %s476_s28, %s476_s28, %s477_s29  }
  0x13   :  { %s478_s7 = smov [#allocation5]   ;;  %s425_s11 = scalar_lea.hbm %s560_s3, 1024 }
  0x14   :  { %s34_s8 = sshll.u32 %s478_s7, 4  ;;  %p426_p8 = scmp.ne.s32.totalorder %s560_s3, %s425_s11  ;;  %s35_s8 = int_to_ptr.vmem [resolvable:$true] %s34_s8 }
  0x15   :  { %p429_p9 = scmp.lt.u32.totalorder %s425_s11, %s560_s3 }
  0x17   :  { %p431_p10 = pnand %p429_p9, %p426_p8 }
  0x19   :  { %434 = shalt.err (!%p431_p10)
}
  0x1a   :  { %s435_s16 = scalar_lea.vmem %s35_s8, 1024  ;;  %p440_p12 = scmp.lt.s32.totalorder %s35_s8, %s35_s8 }
  0x1b   :  { %p436_p11 = scmp.ne.s32.totalorder %s35_s8, %s435_s16  ;;  %p441_p13 = scmp.lt.s32.totalorder %s435_s16, %s435_s16 }
  0x1d   :  { %p442_p0 = por %p441_p13, %p440_p12 }
  0x1f   :  { %p443_p1 = pnand %p442_p0, %p436_p11 }
  0x21   :  { %446 = shalt.err (!%p443_p1)
}
  0x22   :  { %40 = dma.hbm_to_vmem [thread:$0]  %s560_s3, 1024, %s35_s8, [#allocation6], %s476_s28, %s476_s28, %s477_s29  }
  0x23   :  { %469 = dma.done.wait [#allocation3], 1024  }
  0x24   :  { %470 = vsyncadd [#allocation3], 4294966272 }
  0x25   :  { %471 = dma.done.wait [#allocation6], 1024  }
  0x26   :  { %472 = vsyncadd [#allocation6], 4294966272  ;;  %v479_v0 = vmov 0.0   ;;  %vm480_vm0 = vmmov 0   ;;  %v383_v1 = vld [vmem:[#allocation2] sm:$0xff]   ;;  %v384_v2 = vld [vmem:[#allocation2 + $0x8] sm:$0xff]  }
  0x27   :  { %336 = vmatprep.subr.bf16.mxu0 %v479_v0  ;;  %352 = vmatprep.mubr.msk.bf16.mxu0 %vm480_vm0, %v479_v0  ;;  %v385_v3 = vld [vmem:[#allocation2 + $0x10] sm:$0xff]   ;;  %v391_v4 = vld [vmem:[#allocation5] sm:$0xff]   ;;  %v386_v5 = vld [vmem:[#allocation2 + $0x18] sm:$0xff]  }
  0x28   :  { %356 = vmatprep.subr.bf16.mxu1 %v479_v0  ;;  %372 = vmatprep.mubr.msk.bf16.mxu1 %vm480_vm0, %v479_v0  ;;  %v392_v6 = vld [vmem:[#allocation5 + $0x8] sm:$0xff]   ;;  %v387_v7 = vld [vmem:[#allocation2 + $0x20] sm:$0xff]   ;;  %v393_v8 = vld [vmem:[#allocation5 + $0x10] sm:$0xff]  }
  0x29   :  { %337 = vmatpush3.bf16.msra.mxu0 %v383_v1  ;;  %357 = vmatpush3.bf16.msra.mxu1 %v391_v4  ;;  %v388_v9 = vld [vmem:[#allocation2 + $0x28] sm:$0xff]   ;;  %v389_v10 = vld [vmem:[#allocation2 + $0x30] sm:$0xff]   ;;  %v390_v11 = vld [vmem:[#allocation2 + $0x38] sm:$0xff]  }
  0x2a   :  { %338 = vmatprep.subr.bf16.mxu0 %v479_v0  ;;  %358 = vmatprep.subr.bf16.mxu1 %v479_v0  ;;  %v50_v12 = vld [vmem:[%s557_s0] sm:$0xff]  ;;  %v394_v14 = vld [vmem:[#allocation5 + $0x18] sm:$0xff]   ;;  %v396_v16 = vld [vmem:[#allocation5 + $0x28] sm:$0xff]  }
  0x2b   :  { %v51_v13 = vpack.c.bf16 %v50_v12, %v50_v12  ;;  %v395_v15 = vld [vmem:[#allocation5 + $0x20] sm:$0xff]   ;;  %v397_v17 = vld [vmem:[#allocation5 + $0x30] sm:$0xff]   ;;  %v398_v18 = vld [vmem:[#allocation5 + $0x38] sm:$0xff]  }
  0x2c   :  { %v300_v19 = vld [vmem:[%s559_s2] ss:$0 sm:$0xff]  ;;  %s481_s2 = smov [#allocation7]  }
  0x2d   :  { %339 = vmatpush3.bf16.msra.mxu0 %v384_v2  ;;  %359 = vmatpush3.bf16.msra.mxu1 %v392_v6  ;;  %v309_v30 = vld [vmem:[%s561_s4] ss:$0 sm:$0xff]  ;;  %s290_s22 = sshll.u32 %s481_s2, 4  ;;  %s291_s22 = int_to_ptr.vmem [resolvable:$true] %s290_s22 }
  0x2e   :  { %340 = vmatprep.subr.bf16.mxu0 %v479_v0  ;;  %360 = vmatprep.subr.bf16.mxu1 %v479_v0  ;;  %s447_s23 = scalar_lea.vmem %s291_s22, 128  ;;  %p452_p3 = scmp.lt.s32.totalorder %s291_s22, %s291_s22 }
  0x2f   :  { %p448_p2 = scmp.ne.s32.totalorder %s291_s22, %s447_s23  ;;  %p453_p4 = scmp.lt.s32.totalorder %s447_s23, %s447_s23 }
  0x31   :  { %341 = vmatpush3.bf16.msra.mxu0 %v385_v3  ;;  %361 = vmatpush3.bf16.msra.mxu1 %v393_v8  ;;  %p454_p5 = por %p453_p4, %p452_p3 }
  0x32   :  { %342 = vmatprep.subr.bf16.mxu0 %v479_v0  ;;  %362 = vmatprep.subr.bf16.mxu1 %v479_v0 }
  0x33   :  { %p455_p6 = pnand %p454_p5, %p448_p2 }
  0x35   :  { %343 = vmatpush3.bf16.msra.mxu0 %v386_v5  ;;  %363 = vmatpush3.bf16.msra.mxu1 %v394_v14 }
  0x36   :  { %344 = vmatprep.subr.bf16.mxu0 %v479_v0  ;;  %364 = vmatprep.subr.bf16.mxu1 %v479_v0 }
  0x39   :  { %345 = vmatpush3.bf16.msra.mxu0 %v387_v7  ;;  %365 = vmatpush3.bf16.msra.mxu1 %v395_v15 }
  0x3a   :  { %346 = vmatprep.subr.bf16.mxu0 %v479_v0  ;;  %366 = vmatprep.subr.bf16.mxu1 %v479_v0 }
  0x3d   :  { %347 = vmatpush3.bf16.msra.mxu0 %v388_v9  ;;  %367 = vmatpush3.bf16.msra.mxu1 %v396_v16 }
  0x3e   :  { %348 = vmatprep.subr.bf16.mxu0 %v479_v0  ;;  %368 = vmatprep.subr.bf16.mxu1 %v479_v0 }
  0x41   :  { %349 = vmatpush3.bf16.msra.mxu0 %v389_v10  ;;  %369 = vmatpush3.bf16.msra.mxu1 %v397_v17 }
  0x42   :  { %350 = vmatprep.subr.bf16.mxu0 %v479_v0  ;;  %370 = vmatprep.subr.bf16.mxu1 %v479_v0 }
  0x45   :  { %351 = vmatpush3.bf16.msra.mxu0 %v390_v11  ;;  %371 = vmatpush3.bf16.msra.mxu1 %v398_v18 }
  0x48   :  { %353 = vmatmul.mubr.bf16.vlgmr.msra.gmra.mrb[0].mxu0 %v51_v13 }
 0x11b   :  { %v157_v20 = vpop.f32.mrb[0].mxu0 }
 0x11c   :  { %v158_v21 = vadd.f32 %v300_v19, %v157_v20  ;;  %v354_v22 = vpop.f32.mrb[1].mxu0 }
 0x11d   :  { %v160_v23 = vpop.f32.mrb[2].mxu0 }
 0x11e   :  { %v163_v24 = vmul.f32 0.5, %v158_v21  ;;  %v355_v25 = vpop.f32.mrb[3].mxu0 }
 0x120   :  { %399 = vtanh.f32 %v163_v24 }
 0x12a   :  { %v400_v26 = vpop.eup %399 }
 0x12b   :  { %v165_v27 = vadd.f32 1.0, %v400_v26 }
 0x12d   :  { %v166_v28 = vmul.f32 0.5, %v165_v27 }
 0x12f   :  { %v167_v29 = vpack.c.bf16 %v166_v28, %v166_v28 }
 0x131   :  { %373 = vmatmul.mubr.bf16.vlgmr.msra.gmra.mrb[0].mxu1 %v167_v29 }
 0x204   :  { %v273_v31 = vpop.f32.mrb[0].mxu1 }
 0x205   :  { %v274_v32 = vadd.f32 %v309_v30, %v273_v31  ;;  %v374_v33 = vpop.f32.mrb[1].mxu1 }
 0x206   :  { %v276_v34 = vpop.f32.mrb[2].mxu1 }
 0x207   :  { %v279_v35 = vmul.f32 0.5, %v274_v32  ;;  %v375_v36 = vpop.f32.mrb[3].mxu1 }
 0x209   :  { %401 = vtanh.f32 %v279_v35 }
 0x213   :  { %v402_v37 = vpop.eup %401 }
 0x214   :  { %v281_v38 = vadd.f32 1.0, %v402_v37 }
 0x216   :  { %v282_v39 = vmul.f32 0.5, %v281_v38 }
 0x218   :  { %283 = vst [vmem:[#allocation7] sm:$0xff] %v282_v39 }
 0x219   :  { %458 = shalt.err (!%p455_p6)
}
 0x21a   :  { %s459_s25 = scalar_lea.hbm %s562_s5, 128 }
 0x21b   :  { %p460_p7 = scmp.ne.s32.totalorder %s562_s5, %s459_s25  ;;  %p463_p8 = scmp.lt.u32.totalorder %s459_s25, %s562_s5 }
 0x21d   :  { %p465_p9 = pnand %p463_p8, %p460_p7 }
 0x21f   :  { %468 = shalt.err (!%p465_p9)
}
 0x220   :  { %293 = dma.vmem_to_hbm [thread:$0]  %s291_s22, 128, %s562_s5, [#allocation4]  }
 0x221   :  { %473 = dma.done.wait [#allocation4], 128  }
 0x222   :  { %474 = vsyncadd [#allocation4], 4294967168 }
 0x223   :  { %297 = vsyncpa [#allocation3], 1 }
 0x224   :  { %298 = vsyncpa [#allocation6], 1 }
 0x225   :  { %299 = vsyncpa [#allocation4], 1 }

</bundles_post_ra>
